<compile_context>
chip_gen: v6e
topology: v6e:2x2x1
jax: 0.10.0
libtpu: 0.0.40
codegen_flags: <defaults>
</compile_context>

<pallas_src>
import functools

import jax
import jax.numpy as jnp
from jax.experimental import pallas as pl
from jax.experimental.pallas import tpu as pltpu

_LANES = 128


def _ipow(x, p):
    """Integer power via repeated multiplies (avoids exp/log lowering)."""
    out = x
    for _ in range(p - 1):
        out = out * x
    return out


def _dice_kernel(p_ref, t_ref, out_ref, num_acc, den_acc, *,
                 smooth, p_exp, s_total, tile_s):
    """Per-row dice loss.

    Grid: (row i = "parallel", feature tile k = "arbitrary" reduction).
    Blocks are (1, tile_s, 128); accumulators are lane-wide (1, 128) f32 and
    the final lane reduce + loss write happen only on the last k step.
    """
    k = pl.program_id(1)

    @pl.when(k == 0)
    def _():
        num_acc[...] = jnp.zeros_like(num_acc)
        den_acc[...] = jnp.zeros_like(den_acc)

    pred = p_ref[0].astype(jnp.float32)   # (tile_s, 128)
    tgt = t_ref[0].astype(jnp.float32)

    if s_total % tile_s != 0:
        # Ragged last tile: zero out rows past the end of the feature axis
        # (block data beyond the array bound is unspecified).
        base = k * tile_s
        row = jax.lax.broadcasted_iota(jnp.int32, (tile_s, _LANES), 0)
        valid = row < (s_total - base)
        pred = jnp.where(valid, pred, 0.0)
        tgt = jnp.where(valid, tgt, 0.0)

    prod = pred * tgt
    if p_exp == 2:
        den_tile = pred * pred + tgt * tgt
    elif isinstance(p_exp, int) and p_exp >= 1:
        den_tile = _ipow(pred, p_exp) + _ipow(tgt, p_exp)
    else:
        # Non-integer p: matches torch.pow semantics (NaN for negative base).
        den_tile = pred ** p_exp + tgt ** p_exp

    # Partial reduce over the sublane (tile_s) axis only: VALU vreg adds plus a
    # single sublane reduce per tile.  The 128-lane reduce is deferred.
    num_acc[...] += jnp.sum(prod, axis=0, keepdims=True)
    den_acc[...] += jnp.sum(den_tile, axis=0, keepdims=True)

    @pl.when(k == pl.num_programs(1) - 1)
    def _():
        num = jnp.sum(num_acc[...]) + jnp.float32(smooth)
        den = jnp.sum(den_acc[...]) + jnp.float32(smooth)
        val = 1.0 - num / den
        # Lane/sublane-dense output block; wrapper reads element [:, 0, 0].
        out_ref[...] = jnp.broadcast_to(val, out_ref.shape)


def binary_dice_loss(predict, target, *, smooth=1.0, p=2, reduction="mean",
                     tile_s=None):
    """JAX/Pallas equivalent of BinaryDiceLoss.forward."""
    assert predict.shape[0] == target.shape[0], \
        "predict & target batch size don't match"
    n = predict.shape[0]
    pred2d = predict.reshape(n, -1)
    tgt2d = target.reshape(n, -1)
    d = pred2d.shape[1]

    if d % _LANES != 0:
        # Uncommon path: pad the feature axis up to the next lane multiple
        # (<=127 zeros/row; zeros don't change any of the sums).
        # TODO(synk): fold this into the kernel with lane masking to avoid the
        # extra HBM pass for non-128-multiple feature sizes.
        pad = _LANES - d % _LANES
        pred2d = jnp.pad(pred2d, ((0, 0), (0, pad)))
        tgt2d = jnp.pad(tgt2d, ((0, 0), (0, pad)))

    s_total = pred2d.shape[1] // _LANES
    pred3d = pred2d.reshape(n, s_total, _LANES)
    tgt3d = tgt2d.reshape(n, s_total, _LANES)

    # Tile the folded feature axis so each input block is ~2 MiB (f32).
    if tile_s is None:
        tile_s = 4096
    if s_total <= tile_s:
        tile_s = s_total                      # full-extent block (any size ok)
    else:
        tile_s = max(8, (tile_s // 8) * 8)    # multiple of 8 sublanes
    num_k = pl.cdiv(s_total, tile_s)

    # Size the scoped-VMEM limit from the actual double-buffered working set,
    # capped at 48 MiB so it stays safe on v7x's 64 MiB physical VMEM.
    in_bytes = tile_s * _LANES * (jnp.dtype(pred3d.dtype).itemsize
                                  + jnp.dtype(tgt3d.dtype).itemsize)
    vmem_limit = int(min(48 << 20, max(16 << 20, 3 * in_bytes)))

    kernel = functools.partial(_dice_kernel, smooth=float(smooth), p_exp=p,
                               s_total=s_total, tile_s=tile_s)

    out = pl.pallas_call(
        kernel,
        out_shape=jax.ShapeDtypeStruct((n, 8, _LANES), jnp.float32),
        grid_spec=pltpu.PrefetchScalarGridSpec(
            num_scalar_prefetch=0,
            grid=(n, num_k),
            in_specs=[
                pl.BlockSpec((1, tile_s, _LANES), lambda i, k: (i, k, 0)),
                pl.BlockSpec((1, tile_s, _LANES), lambda i, k: (i, k, 0)),
            ],
            out_specs=pl.BlockSpec((1, 8, _LANES), lambda i, k: (i, 0, 0)),
            scratch_shapes=[
                pltpu.VMEM((1, _LANES), jnp.float32),  # num accumulator
                pltpu.VMEM((1, _LANES), jnp.float32),  # den accumulator
            ],
        ),
        compiler_params=pltpu.CompilerParams(
            dimension_semantics=("parallel", "arbitrary"),
            vmem_limit_bytes=vmem_limit,
        ),
    )(pred3d, tgt3d)

    loss = out[:, 0, 0]  # shape [N]
    if reduction == "mean":
        return loss.mean()
    elif reduction == "sum":
        return loss.sum()
    elif reduction == "none":
        return loss
    else:
        raise Exception("Unexpected reduction {}".format(reduction))


def _reference(predict, target, smooth=1.0, p=2, reduction="mean"):
    n = predict.shape[0]
    pr = predict.reshape(n, -1).astype(jnp.float32)
    tg = target.reshape(n, -1).astype(jnp.float32)
    num = jnp.sum(pr * tg, axis=1) + smooth
    den = jnp.sum(pr ** p + tg ** p, axis=1) + smooth
    loss = 1 - num / den
    if reduction == "mean":
        return loss.mean()
    if reduction == "sum":
        return loss.sum()
    return loss


if __name__ == "__main__":
    key = jax.random.PRNGKey(0)
    kp, kt = jax.random.split(key)
    # predict: sigmoid-like probabilities, target: binary mask; shape [N, C, H, W]
    predict = jax.nn.sigmoid(jax.random.normal(kp, (2, 4, 16, 16), jnp.float32))
    target = (jax.random.uniform(kt, (2, 4, 16, 16)) > 0.5).astype(jnp.float32)

    out = binary_dice_loss(predict, target, smooth=1.0, p=2, reduction="mean")
    out = jax.block_until_ready(out)
    ref = _reference(predict, target, smooth=1.0, p=2, reduction="mean")
    assert jnp.allclose(out, ref, rtol=1e-5, atol=1e-6), (out, ref)

    # Also exercise 'none' reduction and a ragged (non-tile-aligned) case.
    out_n = jax.block_until_ready(
        binary_dice_loss(predict, target, reduction="none", tile_s=8))
    ref_n = _reference(predict, target, reduction="none")
    assert jnp.allclose(out_n, ref_n, rtol=1e-5, atol=1e-6), (out_n, ref_n)

    print("KERNEL_OK")
</pallas_src>

<mosaic_0001>
module attributes {stable_mosaic.version = 11 : i64} {
  func.func @_dice_kernel(%arg0: i32, %arg1: i32, %arg2: memref<1x8x128xf32, #tpu.memory_space<vmem>>, %arg3: memref<1x8x128xf32, #tpu.memory_space<vmem>>, %arg4: memref<1x8x128xf32, #tpu.memory_space<vmem>>, %arg5: memref<1x128xf32, #tpu.memory_space<vmem>>, %arg6: memref<1x128xf32, #tpu.memory_space<vmem>>) attributes {dimension_semantics = [#tpu.dimension_semantics<parallel>, #tpu.dimension_semantics<arbitrary>], iteration_bounds = array<i64: 2, 1>, scalar_prefetch = 0 : i64, scratch_operands = 2 : i64, tpu.core_type = #tpu.core_type<tc>, window_params = [{transform_indices = @transform_0, window_bounds = array<i64: 1, 8, 128>}, {transform_indices = @transform_1, window_bounds = array<i64: 1, 8, 128>}, {transform_indices = @transform_2, window_bounds = array<i64: 1, 8, 128>}]} {
    %c0_i32 = arith.constant 0 : i32
    %0 = arith.cmpi eq, %arg1, %c0_i32 : i32
    %1 = arith.extui %0 : i1 to i32
    %c0_i32_0 = arith.constant 0 : i32
    %2 = arith.cmpi ne, %1, %c0_i32_0 : i32
    scf.if %2 {
      %cst_17 = arith.constant 0.000000e+00 : f32
      %24 = vector.broadcast %cst_17 : f32 to vector<1x128xf32>
      %c0_18 = arith.constant 0 : index
      %c0_19 = arith.constant 0 : index
      %25 = vector.load %arg5[%c0_18, %c0_19] : memref<1x128xf32, #tpu.memory_space<vmem>>, vector<1x128xf32>
      tpu.vector_store %arg5[%c0_18, %c0_19], %24 {strides = array<i32>} : memref<1x128xf32, #tpu.memory_space<vmem>>, vector<1x128xf32>,
      %cst_20 = arith.constant 0.000000e+00 : f32
      %26 = vector.broadcast %cst_20 : f32 to vector<1x128xf32>
      %c0_21 = arith.constant 0 : index
      %c0_22 = arith.constant 0 : index
      %27 = vector.load %arg6[%c0_21, %c0_22] : memref<1x128xf32, #tpu.memory_space<vmem>>, vector<1x128xf32>
      tpu.vector_store %arg6[%c0_21, %c0_22], %26 {strides = array<i32>} : memref<1x128xf32, #tpu.memory_space<vmem>>, vector<1x128xf32>,
    } else {
    }
    %c0 = arith.constant 0 : index
    %c0_1 = arith.constant 0 : index
    %c0_2 = arith.constant 0 : index
    %3 = vector.load %arg2[%c0, %c0_1, %c0_2] : memref<1x8x128xf32, #tpu.memory_space<vmem>>, vector<1x8x128xf32>
    %4 = vector.shape_cast %3 : vector<1x8x128xf32> to vector<8x128xf32>
    %c0_3 = arith.constant 0 : index
    %c0_4 = arith.constant 0 : index
    %c0_5 = arith.constant 0 : index
    %5 = vector.load %arg3[%c0_3, %c0_4, %c0_5] : memref<1x8x128xf32, #tpu.memory_space<vmem>>, vector<1x8x128xf32>
    %6 = vector.shape_cast %5 : vector<1x8x128xf32> to vector<8x128xf32>
    %7 = arith.mulf %4, %6 : vector<8x128xf32>
    %8 = arith.mulf %4, %4 : vector<8x128xf32>
    %9 = arith.mulf %6, %6 : vector<8x128xf32>
    %10 = arith.addf %8, %9 : vector<8x128xf32>
    %c0_6 = arith.constant 0 : index
    %c0_7 = arith.constant 0 : index
    %11 = vector.load %arg5[%c0_6, %c0_7] : memref<1x128xf32, #tpu.memory_space<vmem>>, vector<1x128xf32>
    %cst = arith.constant dense<0.000000e+00> : vector<128xf32>
    %12 = vector.multi_reduction <add>, %7, %cst [0] : vector<8x128xf32> to vector<128xf32>
    %13 = vector.shape_cast %12 : vector<128xf32> to vector<1x128xf32>
    %14 = arith.addf %11, %13 : vector<1x128xf32>
    %c0_8 = arith.constant 0 : index
    %c0_9 = arith.constant 0 : index
    %15 = vector.load %arg5[%c0_8, %c0_9] : memref<1x128xf32, #tpu.memory_space<vmem>>, vector<1x128xf32>
    tpu.vector_store %arg5[%c0_8, %c0_9], %14 {strides = array<i32>} : memref<1x128xf32, #tpu.memory_space<vmem>>, vector<1x128xf32>,
    %c0_10 = arith.constant 0 : index
    %c0_11 = arith.constant 0 : index
    %16 = vector.load %arg6[%c0_10, %c0_11] : memref<1x128xf32, #tpu.memory_space<vmem>>, vector<1x128xf32>
    %cst_12 = arith.constant dense<0.000000e+00> : vector<128xf32>
    %17 = vector.multi_reduction <add>, %10, %cst_12 [0] : vector<8x128xf32> to vector<128xf32>
    %18 = vector.shape_cast %17 : vector<128xf32> to vector<1x128xf32>
    %19 = arith.addf %16, %18 : vector<1x128xf32>
    %c0_13 = arith.constant 0 : index
    %c0_14 = arith.constant 0 : index
    %20 = vector.load %arg6[%c0_13, %c0_14] : memref<1x128xf32, #tpu.memory_space<vmem>>, vector<1x128xf32>
    tpu.vector_store %arg6[%c0_13, %c0_14], %19 {strides = array<i32>} : memref<1x128xf32, #tpu.memory_space<vmem>>, vector<1x128xf32>,
    %c0_i32_15 = arith.constant 0 : i32
    %21 = arith.cmpi eq, %arg1, %c0_i32_15 : i32
    %22 = arith.extui %21 : i1 to i32
    %c0_i32_16 = arith.constant 0 : i32
    %23 = arith.cmpi ne, %22, %c0_i32_16 : i32
    scf.if %23 {
      %c0_17 = arith.constant 0 : index
      %c0_18 = arith.constant 0 : index
      %24 = vector.load %arg5[%c0_17, %c0_18] : memref<1x128xf32, #tpu.memory_space<vmem>>, vector<1x128xf32>
      %25 = vector.shape_cast %24 : vector<1x128xf32> to vector<1x1x128xf32>
      %cst_19 = arith.constant dense<0.000000e+00> : vector<1xf32>
      %26 = vector.multi_reduction <add>, %25, %cst_19 [1, 2] : vector<1x1x128xf32> to vector<1xf32>
      %27 = vector.shape_cast %26 : vector<1xf32> to vector<1x1x1xf32>
      %28 = vector.extract %27[0, 0, 0] : f32 from vector<1x1x1xf32>
      %cst_20 = arith.constant 1.000000e+00 : f32
      %29 = arith.addf %28, %cst_20 : f32
      %c0_21 = arith.constant 0 : index
      %c0_22 = arith.constant 0 : index
      %30 = vector.load %arg6[%c0_21, %c0_22] : memref<1x128xf32, #tpu.memory_space<vmem>>, vector<1x128xf32>
      %31 = vector.shape_cast %30 : vector<1x128xf32> to vector<1x1x128xf32>
      %cst_23 = arith.constant dense<0.000000e+00> : vector<1xf32>
      %32 = vector.multi_reduction <add>, %31, %cst_23 [1, 2] : vector<1x1x128xf32> to vector<1xf32>
      %33 = vector.shape_cast %32 : vector<1xf32> to vector<1x1x1xf32>
      %34 = vector.extract %33[0, 0, 0] : f32 from vector<1x1x1xf32>
      %cst_24 = arith.constant 1.000000e+00 : f32
      %35 = arith.addf %34, %cst_24 : f32
      %36 = arith.divf %29, %35 : f32
      %cst_25 = arith.constant 1.000000e+00 : f32
      %37 = arith.subf %cst_25, %36 : f32
      %38 = vector.broadcast %37 : f32 to vector<1x8x128xf32>
      %c0_26 = arith.constant 0 : index
      %c0_27 = arith.constant 0 : index
      %c0_28 = arith.constant 0 : index
      %39 = vector.load %arg4[%c0_26, %c0_27, %c0_28] : memref<1x8x128xf32, #tpu.memory_space<vmem>>, vector<1x8x128xf32>
      tpu.vector_store %arg4[%c0_26, %c0_27, %c0_28], %38 {strides = array<i32>} : memref<1x8x128xf32, #tpu.memory_space<vmem>>, vector<1x8x128xf32>,
    } else {
    }
    return
  }
  func.func @transform_0(%arg0: i32, %arg1: i32) -> (i32, i32, i32) {
    %c0_i32 = arith.constant 0 : i32
    %c0_i32_0 = arith.constant 0 : i32
    return %arg0, %arg1, %c0_i32 : i32, i32, i32
  }
  func.func @transform_1(%arg0: i32, %arg1: i32) -> (i32, i32, i32) {
    %c0_i32 = arith.constant 0 : i32
    %c0_i32_0 = arith.constant 0 : i32
    return %arg0, %arg1, %c0_i32 : i32, i32, i32
  }
  func.func @transform_2(%arg0: i32, %arg1: i32) -> (i32, i32, i32) {
    %c0_i32 = arith.constant 0 : i32
    %c0_i32_0 = arith.constant 0 : i32
    %c0_i32_1 = arith.constant 0 : i32
    return %arg0, %c0_i32, %c0_i32_0 : i32, i32, i32
  }
}

</mosaic_0001>

<bundles_post_ra>
// kernel: tpu_custom_call.1
= control target key start
LH: loop header
LB: loop body
LE: loop exit
PB: predicated region body
PF: predicated region fallthrough
CT: control target
= control target key end

     0   :  { %7 = vsyncpa [#allocation5], 0  ;;  %s821_s0 = inlined_call_operand.hbm [shape: f32[2,8,128], index: 0, kind: input, shape index: {}]   ;;  %s822_s1 = inlined_call_operand.hbm [shape: f32[2,8,128], index: 1, kind: input, shape index: {}]   ;;  %s823_s2 = inlined_call_operand.hbm [shape: f32[2,8,128], index: 2, kind: output, shape index: {}]  }
   0x1   :  { %9 = vsyncpa [#allocation5 + $0x1], 0 }
   0x2   :  { %10 = vsyncpa [#allocation8], 0 }
   0x3   :  { %12 = vsyncpa [#allocation8 + $0x1], 0 }
   0x4   :  { %13 = vsyncpa [#allocation6], 0 }
   0x5   :  { %15 = vsyncpa [#allocation6 + $0x1], 0  ;;  %s649_s9 = smov 0   ;;  %s651_s10 = smov 0  }
   0x6   :  { %s653_s11 = smov 0   ;;  %s655_s12 = smov 0  }
   0x7   :  { %s657_s13 = smov 0   ;;  %s659_s14 = smov 0  }
   0x8 LB: > { %s396_s15 = sadd.s32 4294967295, %s628_s14   ;;  %s397_s16 = sadd.s32 4294967294, %s628_s14   ;;  %s628_s14 = sphi %s659_s14, %s21_s14   ;;  %s624_s13 = sphi %s657_s13, %s835_s13   ;;  %s620_s12 = sphi %s655_s12, %s834_s12   ;;  %s616_s11 = sphi %s653_s11, %s833_s11   ;;  %s612_s10 = sphi %s651_s10, %s832_s10   ;;  %s608_s9 = sphi %s649_s9, %s831_s9  }
   0x9   : > { %s33_s17 = sadd.s32 1, %s624_s13  ;;  %s42_s18 = sadd.s32 1, %s616_s11 }
   0xa   : > { %p35_p0 = scmp.ge.s32.totalorder %s33_s17, 2  ;;  %p49_p1 = scmp.ne.s32.totalorder %s616_s11, %s612_s10 }
   0xb   : > { %p50_p2 = scmp.eq.s32.totalorder %s628_s14, 0  ;;  %p55_p3 = scmp.ne.s32.totalorder %s612_s10, %s608_s9 }
   0xc   : > { %s837_s17 = smov (%p35_p0, %s33_s17), 0  ;;  %p56_p5 = scmp.eq.s32.totalorder %s396_s15, 0 }
   0xd   : > { %p690_p4 = por %p50_p2, %p49_p1  ;;  %s37_s20 = ssub.s32 %s624_s13, %s837_s17 }
   0xe   : > { %p107_p6 = scmp.eq.s32.totalorder %s396_s15, 1  ;;  %p40_p7 = scmp.eq.s32.totalorder %s37_s20, 0 }
   0xf   : > { %p696_p8 = por %p56_p5, %p55_p3  ;;  %p113_p10 = scmp.eq.s32.totalorder %s397_s16, 1 }
  0x10   : > { %p700_p9 = por %p107_p6, %p49_p1  ;;  %p435_p13 = scmp.lt.s32.totalorder %s628_s14, 2 }
  0x11   : > { %s705_s23 = scalar_select %p40_p7, %s616_s11, %s42_s18  }
  0x12   : > { %p707_p11 = por %p113_p10, %p55_p3  ;;  %s714_s25 = sand.u32 1, %s616_s11  }
  0x13   : > { %s400_s26 = sshll.u32 %s714_s25, 3  ;;  %s401_s27 = sshll.u32 %s624_s13, 7 }
  0x14   : > { %s143_s30 = scalar_lea.hbm %s821_s0, %s401_s27  ;;  %s137_s3 = scalar_lea.vmem [#allocation4], %s400_s26 }
  0x15   : > { %s145_s4 = sshll.u32 %s137_s3, 4  ;;  %p723_p0 = pnand %p435_p13, %p690_p4  ;;  %s146_s4 = int_to_ptr.vmem [resolvable:$true] %s145_s4 }
  0x16   : > { %p404_p1 = scmp.ge.s32.totalorder %s628_s14, 1  ;;  %p169_p2 = scmp.lt.s32.totalorder %s628_s14, 3 }
  0x17   : > { %s134_s6 = scalar_lea.sflag [#allocation5], %s714_s25  ;;  %p490_p3 = pneg %p723_p0 }
  0x18   : > { %s501_s7 = scalar_lea.vmem %s146_s4, 128  ;;  %s630_s8 = smov [#allocation4]  }
  0x19   : > { %p502_p5 = scmp.ne.s32.totalorder %s146_s4, %s501_s7  ;;  %s506_s15 = sshll.u32 %s630_s8, 4  ;;  %s507_s15 = int_to_ptr.vmem [resolvable:$false] %s506_s15 }
  0x1a   : > { %s508_s16 = scalar_lea.vmem %s507_s15, 256  ;;  %p509_p4 = scmp.lt.s32.totalorder %s146_s4, %s507_s15 }
  0x1b   : > { %p504_p6 = pnand %p502_p5, %p490_p3  ;;  %p510_p10 = scmp.lt.s32.totalorder %s508_s16, %s501_s7 }
  0x1d   : > { %p505_p7 = pneg %p504_p6  ;;  %p511_p13 = por %p510_p10, %p509_p4 }
  0x1f   : > { %p512_p12 = pnand %p511_p13, %p505_p7 }
  0x21   : > { %515 = shalt.err (!%p512_p12)
}
  0x22   : > { %427 = dma.hbm_to_vmem [thread:$0]  (!%p723_p0), %s143_s30, 128, %s146_s4, %s134_s6  }
  0x23   : > { %p741_p5 = pnand %p404_p1, %p169_p2  ;;  %s162_s28 = scalar_lea.hbm %s822_s1, %s401_s27 }
  0x24   : > { %s156_s29 = scalar_lea.vmem [#allocation7], %s400_s26  ;;  %s153_s7 = scalar_lea.sflag [#allocation8], %s714_s25 }
  0x25   : > { %s164_s3 = sshll.u32 %s156_s29, 4  ;;  %s631_s30 = smov [#allocation7]   ;;  %s165_s3 = int_to_ptr.vmem [resolvable:$true] %s164_s3 }
  0x26   : > { %s529_s8 = scalar_lea.vmem %s165_s3, 128  ;;  %s534_s4 = sshll.u32 %s631_s30, 4  ;;  %s535_s4 = int_to_ptr.vmem [resolvable:$false] %s534_s4 }
  0x27   : > { %p530_p12 = scmp.ne.s32.totalorder %s165_s3, %s529_s8  ;;  %s536_s6 = scalar_lea.vmem %s535_s4, 256 }
  0x28   : > { %p537_p1 = scmp.lt.s32.totalorder %s165_s3, %s535_s4  ;;  %p538_p2 = scmp.lt.s32.totalorder %s536_s6, %s529_s8 }
  0x29   : > { %p532_p6 = pnand %p530_p12, %p490_p3 }
  0x2a   : > { %p539_p4 = por %p538_p2, %p537_p1 }
  0x2b   : > { %p533_p7 = pneg %p532_p6 }
  0x2d   : > { %p540_p10 = pnand %p539_p4, %p533_p7 }
  0x2f   : > { %543 = shalt.err (!%p540_p10)
}
  0x30   : > { %430 = dma.hbm_to_vmem [thread:$0]  (!%p723_p0), %s162_s28, 128, %s165_s3, %s153_s7  }
  0x31   : > { %173 = sbr.rel (%p741_p5) target bundleno = 372 (0x174), region = 28  ;;  %s757_s25 = sand.u32 (!%p741_p5), 1, %s612_s10  }
  0x32   : > { %s760_s26 = sshll.u32 (!%p741_p5), %s757_s25, 3  ;;  %s176_s27 = scalar_lea.sflag (!%p741_p5), [#allocation5], %s757_s25 }
  0x33   : > { %s179_s15 = scalar_lea.vmem (!%p741_p5), [#allocation4], %s760_s26 }
  0x36   : > { %595 = dma.done.wait (%p696_p8), %s176_s27, 128  }
  0x37   : > { %597 = vsyncadd (%p696_p8), %s176_s27, 4294967168  ;;  %s185_s5 = scalar_lea.sflag [#allocation8], %s757_s25  ;;  %s188_s16 = scalar_lea.vmem [#allocation7], %s760_s26 }
  0x38   : > { %599 = dma.done.wait (%p696_p8), %s185_s5, 128  }
  0x39   : > { %601 = vsyncadd (%p696_p8), %s185_s5, 4294967168  ;;  %v632_v0 = vmov 0.0   ;;  %v220_v1 = vld [vmem:[%s179_s15] sm:$0xff]  ;;  %v221_v2 = vld [vmem:[%s188_s16] sm:$0xff]  ;;  %vm248_vm0 = vcmask 1040384   ;;  %s409_s29 = sshll.u32 %s620_s12, 7 }
  0x3a   : > { %218 = vst [vmem:[#allocation2] sm:$0x1] %v632_v0  ;;  %219 = vst [vmem:[#allocation3] sm:$0x1] %v632_v0  ;;  %v222_v3 = vmul.f32 %v221_v2, %v220_v1  ;;  %v223_v4 = vmul.f32 %v220_v1, %v220_v1  ;;  %v224_v5 = vmul.f32 %v221_v2, %v221_v2  ;;  %s213_s7 = scalar_lea.vmem [#allocation9], %s760_s26  ;;  %s779_s27 = scalar_lea.hbm %s823_s2, %s409_s29 }
  0x3b   : > { %s293_s8 = sshll.u32 %s213_s7, 4  ;;  %s280_s15 = scalar_lea.sflag [#allocation6], %s757_s25  ;;  %s294_s8 = int_to_ptr.vmem [resolvable:$true] %s293_s8 }
  0x3c   : > { %v227_v6 = vrot.slane %v222_v3, 4  ;;  %v225_v7 = vadd.f32 %v224_v5, %v223_v4  ;;  %s544_s5 = scalar_lea.vmem %s294_s8, 128  ;;  %s633_s16 = smov [#allocation9]  }
  0x3d   : > { %p545_p8 = scmp.ne.s32.totalorder %s294_s8, %s544_s5  ;;  %s548_s12 = sshll.u32 %s633_s16, 4  ;;  %s549_s12 = int_to_ptr.vmem [resolvable:$false] %s548_s12 }
  0x3e   : > { %v228_v8 = vadd.f32 %v227_v6, %v222_v3  ;;  %v236_v9 = vrot.slane %v225_v7, 4  ;;  %s550_s26 = scalar_lea.vmem %s549_s12, 256  ;;  %p551_p13 = scmp.lt.s32.totalorder %s294_s8, %s549_s12 }
  0x3f   : > { %p546_p0 = pnand %p545_p8, %p700_p9  ;;  %p552_p5 = scmp.lt.s32.totalorder %s550_s26, %s544_s5 }
  0x40   : > { %v229_v10 = vrot.slane %v228_v8, 2  ;;  %v237_v11 = vadd.f32 %v236_v9, %v225_v7 }
  0x41   : > { %v226_v16 = vld [vmem:[#allocation2] sm:$0x1]  ;;  %v235_v19 = vld [vmem:[#allocation3] sm:$0x1]  ;;  %p547_p3 = pneg %p546_p0  ;;  %p553_p12 = por %p552_p5, %p551_p13 }
  0x42   : > { %v230_v12 = vadd.f32 %v229_v10, %v228_v8  ;;  %v238_v13 = vrot.slane %v237_v11, 2 }
  0x43   : > { %p554_p6 = pnand %p553_p12, %p547_p3 }
  0x44   : > { %v231_v14 = vrot.slane %v230_v12, 1  ;;  %v239_v15 = vadd.f32 %v238_v13, %v237_v11 }
  0x46   : > { %v232_v17 = vadd.f32 %v231_v14, %v230_v12  ;;  %v240_v18 = vrot.slane %v239_v15, 1 }
  0x48   : > { %v233_v20 = vadd.f32 %v232_v17, %v226_v16  ;;  %v241_v21 = vadd.f32 %v240_v18, %v239_v15 }
  0x4a   : > { %234 = vst [vmem:[#allocation2] sm:$0x1] %v233_v20  ;;  %v242_v22 = vadd.f32 %v241_v21, %v235_v19 }
  0x4c   : > { %243 = vst [vmem:[#allocation3] sm:$0x1] %v242_v22 }
  0x51   : > { %v247_v23 = vld [vmem:[#allocation2] sm:$0x1] }
  0x52   : > { %v249_v24 = vsel %vm248_vm0, %v247_v23, 0.0 }
  0x53   : > { %250 = vadd.xlane.f32.xlu0 %v249_v24  ;;  %v260_v25 = vld [vmem:[#allocation3] sm:$0x1] }
  0x54   : > { %v261_v26 = vsel %vm248_vm0, %v260_v25, 0.0 }
  0x57   : > { %262 = vadd.xlane.f32.xlu0 %v261_v26 }
  0xdc   : > { %v251_v27 = vpop.xlane.xlu0 %250 }
  0xdd   : > { %v252_v28 = vrot.slane %v251_v27, 4 }
  0xdf   : > { %v253_v29 = vadd.f32 %v252_v28, %v251_v27 }
  0xe0   : > { %v263_v30 = vpop.xlane.xlu0 %262 }
  0xe1   : > { %v254_v31 = vrot.slane %v253_v29, 2  ;;  %v264_v32 = vrot.slane %v263_v30, 4 }
  0xe3   : > { %v265_v33 = vadd.f32 %v264_v32, %v263_v30  ;;  %v255_v34 = vadd.f32 %v254_v31, %v253_v29 }
  0xe5   : > { %v266_v35 = vrot.slane %v265_v33, 2  ;;  %v256_v36 = vrot.slane %v255_v34, 1 }
  0xe7   : > { %v267_v37 = vadd.f32 %v266_v35, %v265_v33  ;;  %v257_v38 = vadd.f32 %v256_v36, %v255_v34 }
  0xe9   : > { %412 = vpush %v257_v38  ;;  %v268_v39 = vrot.slane %v267_v37, 1 }
  0xeb   : > { %v269_v40 = vadd.f32 %v268_v39, %v267_v37 }
  0xed   : > { %414 = vpush %v269_v40 }
 0x11a   : > { %s413_s21 = spop %412 }
 0x11b   : > { %s259_s20 = sadd.f32 1.0, %s413_s21 }
 0x11e   : > { %s415_s18 = spop %414 }
 0x11f   : > { %s271_s19 = sadd.f32 1.0, %s415_s18 }
 0x121   : > { %v272_v41 = vstv %s271_s19 }
 0x122   : > { %486 = vrcp.f32 %v272_v41 }
 0x12f   : > { %v487_v42 = vpop.eup %486 }
 0x130   : > { %416 = vpush %v487_v42 }
 0x161   : > { %s417_s28 = spop %416 }
 0x162   : > { %s275_s3 = smul.f32 %s417_s28, %s259_s20 }
 0x164   : > { %s276_s30 = ssub.f32 1.0, %s275_s3 }
 0x166   : > { %v277_v43 = vstv %s276_s30 }
 0x167   : > { %278 = vst [vmem:[%s213_s7] sm:$0xff] %v277_v43 }
 0x168   : > { %557 = shalt.err (!%p554_p6)
}
 0x169   : > { %s558_s21 = scalar_lea.hbm %s779_s27, 128  ;;  %s562_s19 = scalar_lea.hbm %s823_s2, 256 }
 0x16a   : > { %p559_p7 = scmp.ne.s32.totalorder %s779_s27, %s558_s21  ;;  %p563_p4 = scmp.lt.s32.totalorder %s779_s27, %s823_s2 }
 0x16b   : > { %p564_p10 = scmp.lt.s32.totalorder %s562_s19, %s558_s21 }
 0x16c   : > { %p560_p1 = pnand %p559_p7, %p700_p9 }
 0x16d   : > { %p565_p8 = por %p564_p10, %p563_p4 }
 0x16e   : > { %p561_p2 = pneg %p560_p1 }
 0x170   : > { %p566_p0 = pnand %p565_p8, %p561_p2 }
 0x172   : > { %569 = shalt.err (!%p566_p0)
}
 0x173   : > { %422 = dma.vmem_to_hbm [thread:$0]  (%p700_p9), %s294_s8, 128, %s779_s27, %s280_s15  }
 0x174 PF: > { %s305_s29 = sand.u32 1, %s608_s9   ;;  %p830_p3 = scmp.ge.s32.totalorder %s628_s14, 2 }
 0x175   : > { %s306_s3 = scalar_lea.sflag [#allocation6], %s305_s29 }
 0x176   : > { %p432_p13 = pnand %p830_p3, %p707_p11 }
 0x178   : > { %p433_p5 = pneg %p432_p13 }
 0x17a   : > { %603 = dma.done.wait (%p433_p5), %s306_s3, 128  }
 0x17b   : > { %605 = vsyncadd (%p433_p5), %s306_s3, 4294967168  ;;  %s21_s14 = sadd.s32 1, %s628_s14   ;;  %s831_s9 = smov %s612_s10 }
 0x17c   : > { %p18_p12 = scmp.ge.s32.totalorder %s21_s14, 4   ;;  %s832_s10 = smov %s616_s11 }
 0x17d   : > { %s833_s11 = smov %s705_s23  ;;  %s834_s12 = smov %s624_s13 }
 0x17e   : > { %s835_s13 = smov %s837_s17  ;;  %20 = sbr.rel (!%p18_p12) target bundleno = 8 (0x8), region = 94 }
 0x183   :  { %311 = vsyncpa [#allocation5], 1 }
 0x184   :  { %313 = vsyncpa [#allocation5 + $0x1], 1 }
 0x185   :  { %314 = vsyncpa [#allocation8], 1 }
 0x186   :  { %316 = vsyncpa [#allocation8 + $0x1], 1 }
 0x187   :  { %317 = vsyncpa [#allocation6], 1 }
 0x188   :  { %319 = vsyncpa [#allocation6 + $0x1], 1 }

</bundles_post_ra>
